<compile_context>
chip_gen: v7x
topology: tpu7x:2x2x1
jax: 0.10.0
libtpu: 0.0.40
codegen_flags: <defaults>
</compile_context>

<pallas_src>
import math
from functools import partial

import jax
import jax.numpy as jnp
from jax.experimental import pallas as pl
from jax.experimental.pallas import tpu as pltpu

EMBD_DIM = 16
HIDDEN_DIM = 4 * EMBD_DIM                   # 64
LANE = 128
ROWS_PER_SLAB = LANE // EMBD_DIM            # 8 original rows per 128-lane row
HIDDEN_WIDE = ROWS_PER_SLAB * HIDDEN_DIM    # 512
DEFAULT_TM = 4096                           # packed rows per tile (= 32768 original rows)


def _default_vmem_limit_bytes():
    # Per-generation scoped-VMEM budget: ~3/4 of physical VMEM, capped.
    # v5e/v6e: 128 MiB physical -> 96 MiB; v7x: 64 MiB -> 48 MiB.
    try:
        cap = getattr(pltpu.get_tpu_info(), "vmem_capacity_bytes", None)
        if cap:
            return int(min(cap * 3 // 4, 100 * 1024 * 1024))
    except Exception:
        pass
    return 48 * 1024 * 1024  # safe everywhere (fits v7x's 64 MiB physical)


_VMEM_LIMIT_BYTES = _default_vmem_limit_bytes()


def _round_up8(v):
    return -(-int(v) // 8) * 8


def _choose_tm(n_rows, tm):
    """Pick a legal, performant packed-row tile.

    - multiple of 8 (satisfies the (8,128) BlockSpec constraint; Pallas masks
      the partial tail tile), or the full extent for tiny inputs;
    - capped so medium/large inputs keep >= ~4 grid steps (>= 2 per v7x TC).
    """
    n_rows = int(n_rows)
    if n_rows <= 8:
        return n_rows                      # single full-extent block (always legal)
    tm = max(8, (int(tm) // 8) * 8)        # round caller tm down to a multiple of 8
    cap = max(64, _round_up8(pl.cdiv(n_rows, 4)))   # >= ~4 steps, blocks >= 64 rows
    tm_eff = min(tm, cap)
    if tm_eff >= n_rows:
        return n_rows                      # single full-extent block
    return tm_eff


def _ffn_kernel(x_ref, w1_ref, b1_ref, w2_ref, b2_ref, o_ref):
    # x_ref:  (TM, 128) f32   packed activations (8 original rows per row)
    # w1_ref: (128, 512) compute dtype   b1_ref: (1, 512) f32
    # w2_ref: (512, 128) compute dtype   b2_ref: (1, 128) f32
    cdt = w1_ref.dtype
    x = x_ref[...].astype(cdt)
    h = jnp.dot(x, w1_ref[...], preferred_element_type=jnp.float32) + b1_ref[...]
    h = jnp.maximum(h, 0.0).astype(cdt)    # ReLU; hidden kept in compute dtype
    out = jnp.dot(h, w2_ref[...], preferred_element_type=jnp.float32) + b2_ref[...]
    o_ref[...] = out.astype(o_ref.dtype)


def expand_params(w1, b1, w2, b2, compute_dtype=jnp.bfloat16):
    """One-time expansion of Linear weights into block-diagonal packed form.

    w1: (16, 64), b1: (64,)/(1,64), w2: (64, 16), b2: (16,)/(1,16)
    (torch.nn.Linear semantics, weights stored as (in_features, out_features)).
    compute_dtype: dtype of the matmul operands inside the kernel
      (jnp.bfloat16 -> fast / HBM-roofline, jnp.float32 -> exact).
    """
    eye = jnp.eye(ROWS_PER_SLAB, dtype=jnp.float32)
    w1e = jnp.kron(eye, w1.astype(jnp.float32)).astype(compute_dtype)  # (128, 512)
    w2e = jnp.kron(eye, w2.astype(jnp.float32)).astype(compute_dtype)  # (512, 128)
    b1e = jnp.tile(b1.reshape(1, HIDDEN_DIM).astype(jnp.float32), (1, ROWS_PER_SLAB))  # (1, 512)
    b2e = jnp.tile(b2.reshape(1, EMBD_DIM).astype(jnp.float32), (1, ROWS_PER_SLAB))    # (1, 128)
    return w1e, b1e, w2e, b2e


def _ffn_packed_call(x_wide, w1e, b1e, w2e, b2e, tm):
    n_rows = x_wide.shape[0]
    tm_eff = _choose_tm(n_rows, tm)
    grid = (pl.cdiv(n_rows, tm_eff),)
    return pl.pallas_call(
        _ffn_kernel,
        out_shape=jax.ShapeDtypeStruct((n_rows, LANE), x_wide.dtype),
        grid_spec=pltpu.PrefetchScalarGridSpec(
            num_scalar_prefetch=0,
            grid=grid,
            in_specs=[
                pl.BlockSpec((tm_eff, LANE), lambda i: (i, 0)),
                pl.BlockSpec((LANE, HIDDEN_WIDE), lambda i: (0, 0)),
                pl.BlockSpec((1, HIDDEN_WIDE), lambda i: (0, 0)),
                pl.BlockSpec((HIDDEN_WIDE, LANE), lambda i: (0, 0)),
                pl.BlockSpec((1, LANE), lambda i: (0, 0)),
            ],
            out_specs=pl.BlockSpec((tm_eff, LANE), lambda i: (i, 0)),
        ),
        compiler_params=pltpu.CompilerParams(
            dimension_semantics=("parallel",),   # shards grid across v7x's 2 TCs
            vmem_limit_bytes=_VMEM_LIMIT_BYTES,  # per-generation budget
        ),
    )(x_wide, w1e, b1e, w2e, b2e)


@partial(jax.jit, static_argnames=("tm",))
def feed_forward(x, params, tm=DEFAULT_TM):
    """x: (..., EMBD_DIM) float32; params = expand_params(...). Returns same shape.

    Computes ReLU(x @ W1 + b1) @ W2 + b2.
    """
    w1e, b1e, w2e, b2e = params
    orig_shape = x.shape
    assert orig_shape[-1] == EMBD_DIM
    x2d = x.reshape(-1, EMBD_DIM)
    m = x2d.shape[0]
    m_lo = (m // ROWS_PER_SLAB) * ROWS_PER_SLAB   # 8-row-aligned prefix

    pieces = []
    if m_lo > 0:
        # Contiguous row-major packing: (m_lo, 16) -> (m_lo/8, 128), free reshape.
        x_wide = x2d[:m_lo].reshape(m_lo // ROWS_PER_SLAB, LANE)
        out_main = _ffn_packed_call(x_wide, w1e, b1e, w2e, b2e, tm)
        pieces.append(out_main.reshape(m_lo, EMBD_DIM))
    if m_lo < m:
        # <8-row ragged tail: tiny jnp epilogue (avoids O(M) pad/slice copies).
        # The top-left blocks of the expanded params are exactly W1/W2/b1/b2.
        xt = x2d[m_lo:]
        w1s = w1e[:EMBD_DIM, :HIDDEN_DIM]
        w2s = w2e[:HIDDEN_DIM, :EMBD_DIM]
        ht = jnp.maximum(
            jnp.dot(xt.astype(w1s.dtype), w1s, preferred_element_type=jnp.float32)
            + b1e[:, :HIDDEN_DIM],
            0.0,
        )
        ot = (
            jnp.dot(ht.astype(w2s.dtype), w2s, preferred_element_type=jnp.float32)
            + b2e[:, :EMBD_DIM]
        ).astype(x.dtype)
        pieces.append(ot)

    out2d = pieces[0] if len(pieces) == 1 else jnp.concatenate(pieces, axis=0)
    return out2d.reshape(orig_shape)


def init_params(key):
    """Deterministic init mimicking torch.nn.Linear default (uniform +/- 1/sqrt(fan_in))."""
    k1, k2, k3, k4 = jax.random.split(key, 4)
    bound1 = 1.0 / math.sqrt(EMBD_DIM)
    bound2 = 1.0 / math.sqrt(HIDDEN_DIM)
    # stored as (in_features, out_features) so the kernel does x @ W
    w1 = jax.random.uniform(k1, (EMBD_DIM, HIDDEN_DIM), jnp.float32, -bound1, bound1)
    b1 = jax.random.uniform(k2, (1, HIDDEN_DIM), jnp.float32, -bound1, bound1)
    w2 = jax.random.uniform(k3, (HIDDEN_DIM, EMBD_DIM), jnp.float32, -bound2, bound2)
    b2 = jax.random.uniform(k4, (1, EMBD_DIM), jnp.float32, -bound2, bound2)
    return w1, b1, w2, b2


def _ref(x, w1, b1, w2, b2):
    h = jnp.maximum(x.reshape(-1, EMBD_DIM) @ w1 + b1, 0.0)
    return (h @ w2 + b2).reshape(x.shape)


if __name__ == "__main__":
    key = jax.random.PRNGKey(0)
    kx, kx2, kx3, kp = jax.random.split(key, 4)
    w1, b1, w2, b2 = init_params(kp)

    params_bf16 = expand_params(w1, b1, w2, b2, compute_dtype=jnp.bfloat16)
    params_f32 = expand_params(w1, b1, w2, b2, compute_dtype=jnp.float32)

    # Case 1: small shape consistent with the module (batch=2, seq=8, embd=16).
    x = jax.random.normal(kx, (2, 8, EMBD_DIM), jnp.float32)
    ref1 = _ref(x, w1, b1, w2, b2)
    out_bf16 = jax.block_until_ready(feed_forward(x, params_bf16))
    assert out_bf16.shape == x.shape
    assert jnp.allclose(out_bf16, ref1, atol=3e-2, rtol=3e-2)  # bf16 operand path
    out_f32 = jax.block_until_ready(feed_forward(x, params_f32))
    assert jnp.allclose(out_f32, ref1, atol=1e-5, rtol=1e-5)   # exact f32 path

    # Case 2: ragged row count (15 rows) -> aligned-prefix kernel + tiny tail epilogue.
    x2 = jax.random.normal(kx2, (3, 5, EMBD_DIM), jnp.float32)
    out2 = jax.block_until_ready(feed_forward(x2, params_bf16))
    assert out2.shape == x2.shape
    assert jnp.allclose(out2, _ref(x2, w1, b1, w2, b2), atol=3e-2, rtol=3e-2)

    # Case 3: larger batch*seq to exercise a multi-step grid (megacore sharding).
    x3 = jax.random.normal(kx3, (4, 256, EMBD_DIM), jnp.float32)
    out3 = jax.block_until_ready(feed_forward(x3, params_bf16))
    assert out3.shape == x3.shape
    assert jnp.allclose(out3, _ref(x3, w1, b1, w2, b2), atol=3e-2, rtol=3e-2)

    print("KERNEL_OK")
</pallas_src>

<mosaic_0001>
module attributes {stable_mosaic.version = 11 : i64} {
  func.func @_ffn_kernel(%arg0: i32, %arg1: memref<2x128xf32, #tpu.memory_space<vmem>>, %arg2: memref<128x512xbf16, #tpu.memory_space<vmem>>, %arg3: memref<1x512xf32, #tpu.memory_space<vmem>>, %arg4: memref<512x128xbf16, #tpu.memory_space<vmem>>, %arg5: memref<1x128xf32, #tpu.memory_space<vmem>>, %arg6: memref<2x128xf32, #tpu.memory_space<vmem>>) attributes {dimension_semantics = [#tpu.dimension_semantics<parallel>], iteration_bounds = array<i64: 1>, scalar_prefetch = 0 : i64, scratch_operands = 0 : i64, tpu.core_type = #tpu.core_type<tc>, window_params = [{transform_indices = @transform_0, window_bounds = array<i64: 2, 128>}, {pipeline_mode = #tpu.pipeline_mode<synchronous>, transform_indices = @transform_1, window_bounds = array<i64: 128, 512>}, {pipeline_mode = #tpu.pipeline_mode<synchronous>, transform_indices = @transform_2, window_bounds = array<i64: 1, 512>}, {pipeline_mode = #tpu.pipeline_mode<synchronous>, transform_indices = @transform_3, window_bounds = array<i64: 512, 128>}, {pipeline_mode = #tpu.pipeline_mode<synchronous>, transform_indices = @transform_4, window_bounds = array<i64: 1, 128>}, {transform_indices = @transform_5, window_bounds = array<i64: 2, 128>}]} {
    %c0 = arith.constant 0 : index
    %c0_0 = arith.constant 0 : index
    %0 = vector.load %arg1[%c0, %c0_0] : memref<2x128xf32, #tpu.memory_space<vmem>>, vector<2x128xf32>
    %1 = arith.truncf %0 : vector<2x128xf32> to vector<2x128xbf16>
    %c0_1 = arith.constant 0 : index
    %c0_2 = arith.constant 0 : index
    %2 = vector.load %arg2[%c0_1, %c0_2] : memref<128x512xbf16, #tpu.memory_space<vmem>>, vector<128x512xbf16>
    %cst = arith.constant dense<0.000000e+00> : vector<2x512xf32>
    %3 = tpu.matmul %1, %2, %cst {dimension_numbers = #tpu.dot_dimension_numbers<[1], [0], [0], [1], [0, 0, 1, 1], [], []>} : vector<2x128xbf16>, vector<128x512xbf16>, vector<2x512xf32> -> vector<2x512xf32>
    %c0_3 = arith.constant 0 : index
    %c0_4 = arith.constant 0 : index
    %4 = vector.load %arg3[%c0_3, %c0_4] : memref<1x512xf32, #tpu.memory_space<vmem>>, vector<1x512xf32>
    %5 = vector.broadcast %4 : vector<1x512xf32> to vector<2x512xf32>
    %6 = arith.addf %3, %5 : vector<2x512xf32>
    %cst_5 = arith.constant 0.000000e+00 : f32
    %7 = vector.broadcast %cst_5 : f32 to vector<2x512xf32>
    %8 = arith.maximumf %6, %7 : vector<2x512xf32>
    %9 = arith.truncf %8 : vector<2x512xf32> to vector<2x512xbf16>
    %c0_6 = arith.constant 0 : index
    %c0_7 = arith.constant 0 : index
    %10 = vector.load %arg4[%c0_6, %c0_7] : memref<512x128xbf16, #tpu.memory_space<vmem>>, vector<512x128xbf16>
    %cst_8 = arith.constant dense<0.000000e+00> : vector<2x128xf32>
    %11 = tpu.matmul %9, %10, %cst_8 {dimension_numbers = #tpu.dot_dimension_numbers<[1], [0], [0], [1], [0, 0, 1, 1], [], []>} : vector<2x512xbf16>, vector<512x128xbf16>, vector<2x128xf32> -> vector<2x128xf32>
    %c0_9 = arith.constant 0 : index
    %c0_10 = arith.constant 0 : index
    %12 = vector.load %arg5[%c0_9, %c0_10] : memref<1x128xf32, #tpu.memory_space<vmem>>, vector<1x128xf32>
    %13 = vector.broadcast %12 : vector<1x128xf32> to vector<2x128xf32>
    %14 = arith.addf %11, %13 : vector<2x128xf32>
    %c0_11 = arith.constant 0 : index
    %c0_12 = arith.constant 0 : index
    %15 = vector.load %arg6[%c0_11, %c0_12] : memref<2x128xf32, #tpu.memory_space<vmem>>, vector<2x128xf32>
    tpu.vector_store %arg6[%c0_11, %c0_12], %14 {strides = array<i32>} : memref<2x128xf32, #tpu.memory_space<vmem>>, vector<2x128xf32>,
    return
  }
  func.func @transform_0(%arg0: i32) -> (i32, i32) {
    %c0_i32 = arith.constant 0 : i32
    %c0_i32_0 = arith.constant 0 : i32
    return %arg0, %c0_i32 : i32, i32
  }
  func.func @transform_1(%arg0: i32) -> (i32, i32) {
    %c0_i32 = arith.constant 0 : i32
    %c0_i32_0 = arith.constant 0 : i32
    %c0_i32_1 = arith.constant 0 : i32
    return %c0_i32, %c0_i32_0 : i32, i32
  }
  func.func @transform_2(%arg0: i32) -> (i32, i32) {
    %c0_i32 = arith.constant 0 : i32
    %c0_i32_0 = arith.constant 0 : i32
    %c0_i32_1 = arith.constant 0 : i32
    return %c0_i32, %c0_i32_0 : i32, i32
  }
  func.func @transform_3(%arg0: i32) -> (i32, i32) {
    %c0_i32 = arith.constant 0 : i32
    %c0_i32_0 = arith.constant 0 : i32
    %c0_i32_1 = arith.constant 0 : i32
    return %c0_i32, %c0_i32_0 : i32, i32
  }
  func.func @transform_4(%arg0: i32) -> (i32, i32) {
    %c0_i32 = arith.constant 0 : i32
    %c0_i32_0 = arith.constant 0 : i32
    %c0_i32_1 = arith.constant 0 : i32
    return %c0_i32, %c0_i32_0 : i32, i32
  }
  func.func @transform_5(%arg0: i32) -> (i32, i32) {
    %c0_i32 = arith.constant 0 : i32
    %c0_i32_0 = arith.constant 0 : i32
    return %arg0, %c0_i32 : i32, i32
  }
}

</mosaic_0001>

<bundles_post_ra>
// kernel: feed_forward.1
= control target key start
LH: loop header
LB: loop body
LE: loop exit
PB: predicated region body
PF: predicated region fallthrough
CT: control target
= control target key end

     0   :  { %10 = vsyncpa [#allocation3], 0  ;;  %s1022_s0 = inlined_call_operand.vmem [shape: f32[2,128], index: 0, kind: input, shape index: {}]   ;;  %s1023_s1 = inlined_call_operand.hbm [shape: bf16[128,512], index: 1, kind: input, shape index: {}]   ;;  %s1024_s2 = inlined_call_operand.vmem [shape: f32[1,512], index: 2, kind: input, shape index: {}]   ;;  %s1025_s3 = inlined_call_operand.hbm [shape: bf16[512,128], index: 3, kind: input, shape index: {}]   ;;  %s1026_s4 = inlined_call_operand.vmem [shape: f32[1,128], index: 4, kind: input, shape index: {}]   ;;  %s1027_s5 = inlined_call_operand.vmem [shape: f32[2,128], index: 5, kind: output, shape index: {}]  }
   0x1   :  { %11 = vsyncpa [#allocation5], 0  ;;  %s949_s18 = smov [#allocation2]   ;;  %s901_s22 = scalar_lea.hbm %s1023_s1, 4096 }
   0x2   :  { %s19_s19 = sshll.u32 %s949_s18, 4  ;;  %p902_p0 = scmp.ne.s32.totalorder %s1023_s1, %s901_s22  ;;  %s20_s19 = int_to_ptr.vmem [resolvable:$true] %s19_s19 }
   0x3   :  { %p905_p1 = scmp.lt.u32.totalorder %s901_s22, %s1023_s1 }
   0x5   :  { %p907_p2 = pnand %p905_p1, %p902_p0 }
   0x7   :  { %910 = shalt.err (!%p907_p2)
}
   0x8   :  { %s911_s27 = scalar_lea.vmem %s20_s19, 4096  ;;  %p916_p4 = scmp.lt.s32.totalorder %s20_s19, %s20_s19 }
   0x9   :  { %p912_p3 = scmp.ne.s32.totalorder %s20_s19, %s911_s27  ;;  %p917_p5 = scmp.lt.s32.totalorder %s911_s27, %s911_s27 }
   0xb   :  { %p918_p6 = por %p917_p5, %p916_p4 }
   0xd   :  { %p919_p7 = pnand %p918_p6, %p912_p3 }
   0xf   :  { %922 = shalt.err (!%p919_p7)
}
  0x10   :  { %s950_s28 = smov 256   ;;  %s951_s29 = smov 16  }
  0x11   :  { %25 = dma.hbm_to_vmem [thread:$0]  %s1023_s1, 4096, %s20_s19, [#allocation3], %s950_s28, %s950_s28, %s951_s29  }
  0x12   :  { %s952_s7 = smov [#allocation4]   ;;  %s923_s11 = scalar_lea.hbm %s1025_s3, 4096 }
  0x13   :  { %s33_s8 = sshll.u32 %s952_s7, 4  ;;  %p924_p8 = scmp.ne.s32.totalorder %s1025_s3, %s923_s11  ;;  %s34_s8 = int_to_ptr.vmem [resolvable:$true] %s33_s8 }
  0x14   :  { %p927_p9 = scmp.lt.u32.totalorder %s923_s11, %s1025_s3 }
  0x16   :  { %p929_p10 = pnand %p927_p9, %p924_p8 }
  0x18   :  { %932 = shalt.err (!%p929_p10)
}
  0x19   :  { %s933_s16 = scalar_lea.vmem %s34_s8, 4096  ;;  %p938_p12 = scmp.lt.s32.totalorder %s34_s8, %s34_s8 }
  0x1a   :  { %p934_p11 = scmp.ne.s32.totalorder %s34_s8, %s933_s16  ;;  %p939_p13 = scmp.lt.s32.totalorder %s933_s16, %s933_s16 }
  0x1c   :  { %p940_p0 = por %p939_p13, %p938_p12 }
  0x1e   :  { %p941_p1 = pnand %p940_p0, %p934_p11 }
  0x20   :  { %944 = shalt.err (!%p941_p1)
}
  0x21   :  { %s953_s1 = smov 64   ;;  %s954_s17 = smov 4  }
  0x22   :  { %39 = dma.hbm_to_vmem [thread:$0]  %s1025_s3, 4096, %s34_s8, [#allocation5], %s953_s1, %s953_s1, %s954_s17  }
  0x23   :  { %945 = dma.done.wait [#allocation3], 4096  }
  0x24   :  { %946 = vsyncadd [#allocation3], 4294963200 }
  0x25   :  { %947 = dma.done.wait [#allocation5], 4096  }
  0x26   :  { %948 = vsyncadd [#allocation5], 4294963200  ;;  %v955_v0 = vmov 0   ;;  %v821_v1 = vld [vmem:[#allocation2 + $0x4] ss:$16 sps:$4 sm:$0xff]   ;;  %v873_v39 = vld [vmem:[#allocation4 + $0x48] sm:$0xff]  }
  0x27   :  { %297 = vmatprep.mubr.bf16.mxu0 %v955_v0  ;;  %338 = vmatprep.mubr.bf16.mxu1 %v955_v0  ;;  %v823_v2 = vld [vmem:[#allocation2 + $0xc] ss:$16 sps:$4 sm:$0xff]   ;;  %v825_v3 = vld [vmem:[#allocation2] ss:$16 sps:$4 sm:$0xff]   ;;  %v826_v4 = vld [vmem:[#allocation2 + $0x8] ss:$16 sps:$4 sm:$0xff]  }
  0x28   :  { %265 = vmatprep.subr.bf16.mxu0 %v821_v1  ;;  %306 = vmatprep.subr.bf16.mxu1 %v823_v2  ;;  %v827_v5 = vld [vmem:[#allocation2 + $0x24] ss:$16 sps:$4 sm:$0xff]   ;;  %v829_v6 = vld [vmem:[#allocation2 + $0x2c] ss:$16 sps:$4 sm:$0xff]   ;;  %v831_v7 = vld [vmem:[#allocation2 + $0x20] ss:$16 sps:$4 sm:$0xff]  }
  0x29   :  { %266 = vmatpush1.bf16.msra.mxu0 %v825_v3  ;;  %307 = vmatpush1.bf16.msra.mxu1 %v826_v4  ;;  %v832_v8 = vld [vmem:[#allocation2 + $0x28] ss:$16 sps:$4 sm:$0xff]   ;;  %v833_v9 = vld [vmem:[#allocation2 + $0x44] ss:$16 sps:$4 sm:$0xff]   ;;  %v835_v10 = vld [vmem:[#allocation2 + $0x4c] ss:$16 sps:$4 sm:$0xff]   ;;  %v85_v3 = vlaneseq }
  0x2a   :  { %267 = vmatprep.subr.bf16.mxu0 %v827_v5  ;;  %308 = vmatprep.subr.bf16.mxu1 %v829_v6  ;;  %v837_v11 = vld [vmem:[#allocation2 + $0x40] ss:$16 sps:$4 sm:$0xff]   ;;  %v838_v12 = vld [vmem:[#allocation2 + $0x48] ss:$16 sps:$4 sm:$0xff]   ;;  %v839_v13 = vld [vmem:[#allocation2 + $0x64] ss:$16 sps:$4 sm:$0xff]  }
  0x2b   :  { %v841_v14 = vld [vmem:[#allocation2 + $0x6c] ss:$16 sps:$4 sm:$0xff]   ;;  %v843_v15 = vld [vmem:[#allocation2 + $0x60] ss:$16 sps:$4 sm:$0xff]   ;;  %v844_v16 = vld [vmem:[#allocation2 + $0x68] ss:$16 sps:$4 sm:$0xff]  }
  0x2c   :  { %v845_v17 = vld [vmem:[#allocation2 + $0x84] ss:$16 sps:$4 sm:$0xff]   ;;  %v847_v18 = vld [vmem:[#allocation2 + $0x8c] ss:$16 sps:$4 sm:$0xff]   ;;  %v849_v19 = vld [vmem:[#allocation2 + $0x80] ss:$16 sps:$4 sm:$0xff]  }
  0x2d   :  { %268 = vmatpush1.bf16.msra.mxu0 %v831_v7  ;;  %309 = vmatpush1.bf16.msra.mxu1 %v832_v8  ;;  %v850_v20 = vld [vmem:[#allocation2 + $0x88] ss:$16 sps:$4 sm:$0xff]   ;;  %v851_v21 = vld [vmem:[#allocation2 + $0xa4] ss:$16 sps:$4 sm:$0xff]   ;;  %v853_v22 = vld [vmem:[#allocation2 + $0xac] ss:$16 sps:$4 sm:$0xff]  }
  0x2e   :  { %269 = vmatprep.subr.bf16.mxu0 %v833_v9  ;;  %310 = vmatprep.subr.bf16.mxu1 %v835_v10  ;;  %v855_v23 = vld [vmem:[#allocation2 + $0xa0] ss:$16 sps:$4 sm:$0xff]   ;;  %v856_v24 = vld [vmem:[#allocation2 + $0xa8] ss:$16 sps:$4 sm:$0xff]   ;;  %v857_v25 = vld [vmem:[#allocation2 + $0xc4] ss:$16 sps:$4 sm:$0xff]  }
  0x2f   :  { %v859_v26 = vld [vmem:[#allocation2 + $0xcc] ss:$16 sps:$4 sm:$0xff]   ;;  %v861_v27 = vld [vmem:[#allocation2 + $0xc0] ss:$16 sps:$4 sm:$0xff]   ;;  %v862_v28 = vld [vmem:[#allocation2 + $0xc8] ss:$16 sps:$4 sm:$0xff]  }
  0x30   :  { %v863_v29 = vld [vmem:[#allocation2 + $0xe4] ss:$16 sps:$4 sm:$0xff]   ;;  %v865_v30 = vld [vmem:[#allocation2 + $0xec] ss:$16 sps:$4 sm:$0xff]   ;;  %v867_v31 = vld [vmem:[#allocation2 + $0xe0] ss:$16 sps:$4 sm:$0xff]  }
  0x31   :  { %270 = vmatpush1.bf16.msra.mxu0 %v837_v11  ;;  %311 = vmatpush1.bf16.msra.mxu1 %v838_v12  ;;  %v868_v32 = vld [vmem:[#allocation2 + $0xe8] ss:$16 sps:$4 sm:$0xff]   ;;  %v49_v33 = vld [vmem:[%s1022_s0] sm:$0x3]  ;;  %v877_v43 = vld [vmem:[#allocation4 + $0x50] sm:$0xff]   ;;  %v86_v4 = vshrl.u32 %v85_v3, 7 }
  0x32   :  { %271 = vmatprep.subr.bf16.mxu0 %v839_v13  ;;  %312 = vmatprep.subr.bf16.mxu1 %v841_v14  ;;  %v869_v34 = vld [vmem:[#allocation4 + $0x40] sm:$0xff]   ;;  %v50_v37 = vpack.c.bf16 %v49_v33, %v49_v33  ;;  %v874_v40 = vld [vmem:[#allocation4 + $0xc8] sm:$0xff]   ;;  %v878_v44 = vld [vmem:[#allocation4 + $0xd0] sm:$0xff]  }
  0x33   :  { %v870_v35 = vld [vmem:[#allocation4 + $0xc0] sm:$0xff]   ;;  %v875_v41 = vld [vmem:[#allocation4 + $0x8] sm:$0xff]   ;;  %v879_v45 = vld [vmem:[#allocation4 + $0x10] sm:$0xff]   ;;  %v87_v5 = vsub.s32 0, %v86_v4  ;;  %v95_v6 = vsub.s32 2, %v86_v4  ;;  %v91_v8 = vsub.s32 1, %v86_v4 }
  0x34   :  { %v871_v36 = vld [vmem:[#allocation4] sm:$0xff]   ;;  %v876_v42 = vld [vmem:[#allocation4 + $0x88] sm:$0xff]   ;;  %v880_v46 = vld [vmem:[#allocation4 + $0x90] sm:$0xff]   ;;  %v99_v9 = vsub.s32 3, %v86_v4 }
  0x35   :  { %272 = vmatpush1.bf16.msra.mxu0 %v843_v15  ;;  %313 = vmatpush1.bf16.msra.mxu1 %v844_v16  ;;  %v872_v38 = vld [vmem:[#allocation4 + $0x80] sm:$0xff]   ;;  %v881_v47 = vld [vmem:[#allocation4 + $0x58] sm:$0xff]   ;;  %v889_v55 = vld [vmem:[#allocation4 + $0x68] sm:$0xff]  }
  0x36   :  { %273 = vmatprep.subr.bf16.mxu0 %v845_v17  ;;  %314 = vmatprep.subr.bf16.mxu1 %v847_v18  ;;  %v882_v48 = vld [vmem:[#allocation4 + $0xd8] sm:$0xff]   ;;  %v885_v51 = vld [vmem:[#allocation4 + $0x60] sm:$0xff]   ;;  %v890_v56 = vld [vmem:[#allocation4 + $0xe8] sm:$0xff]  }
  0x37   :  { %v883_v49 = vld [vmem:[#allocation4 + $0x18] sm:$0xff]   ;;  %v886_v52 = vld [vmem:[#allocation4 + $0xe0] sm:$0xff]   ;;  %v891_v57 = vld [vmem:[#allocation4 + $0x28] sm:$0xff]  }
  0x38   :  { %v884_v50 = vld [vmem:[#allocation4 + $0x98] sm:$0xff]   ;;  %v887_v53 = vld [vmem:[#allocation4 + $0x20] sm:$0xff]   ;;  %v892_v58 = vld [vmem:[#allocation4 + $0xa8] sm:$0xff]  }
  0x39   :  { %274 = vmatpush1.bf16.msra.mxu0 %v849_v19  ;;  %315 = vmatpush1.bf16.msra.mxu1 %v850_v20  ;;  %v888_v54 = vld [vmem:[#allocation4 + $0xa0] sm:$0xff]   ;;  %v893_v59 = vld [vmem:[#allocation4 + $0x70] sm:$0xff]   ;;  %v897_v63 = vld [vmem:[#allocation4 + $0x78] sm:$0xff]  }
  0x3a   :  { %275 = vmatprep.subr.bf16.mxu0 %v851_v21  ;;  %316 = vmatprep.subr.bf16.mxu1 %v853_v22  ;;  %v894_v60 = vld [vmem:[#allocation4 + $0xf0] sm:$0xff]   ;;  %v898_v0 = vld [vmem:[#allocation4 + $0xf8] sm:$0xff]   ;;  %v83_v7 = vld [vmem:[%s1024_s2] sm:$0xf] }
  0x3b   :  { %v895_v61 = vld [vmem:[#allocation4 + $0x30] sm:$0xff]   ;;  %v899_v1 = vld [vmem:[#allocation4 + $0x38] sm:$0xff]   ;;  %v88_v10 = vrot.slane %v83_v7, %v87_v5  ;;  %v96_v11 = vrot.slane %v83_v7, %v95_v6  ;;  %v92_v12 = vrot.slane %v83_v7, %v91_v8  ;;  %v100_v13 = vrot.slane %v83_v7, %v99_v9 }
  0x3c   :  { %v896_v62 = vld [vmem:[#allocation4 + $0xb0] sm:$0xff]   ;;  %v900_v2 = vld [vmem:[#allocation4 + $0xb8] sm:$0xff]  }
  0x3d   :  { %276 = vmatpush1.bf16.msra.mxu0 %v855_v23  ;;  %317 = vmatpush1.bf16.msra.mxu1 %v856_v24 }
  0x3e   :  { %277 = vmatprep.subr.bf16.mxu0 %v857_v25  ;;  %318 = vmatprep.subr.bf16.mxu1 %v859_v26 }
  0x41   :  { %278 = vmatpush1.bf16.msra.mxu0 %v861_v27  ;;  %319 = vmatpush1.bf16.msra.mxu1 %v862_v28 }
  0x42   :  { %279 = vmatprep.subr.bf16.mxu0 %v863_v29  ;;  %320 = vmatprep.subr.bf16.mxu1 %v865_v30 }
  0x45   :  { %280 = vmatpush1.bf16.msra.mxu0 %v867_v31  ;;  %321 = vmatpush1.bf16.msra.mxu1 %v868_v32 }
  0x46   :  { %770 = vmatprep.subr.bf16.mxu0 %v869_v34  ;;  %792 = vmatprep.subr.bf16.mxu1 %v870_v35 }
  0x48   :  { %298 = vmatmul.mubr.bf16.vlgmr.msra.gmra.mrb[0].mxu0 %v50_v37  ;;  %339 = vmatmul.mubr.bf16.vlgmr.msra.gmra.mrb[0].mxu1 %v50_v37 }
  0x49   :  { %771 = vmatpush3.bf16.msra.mxu0 %v871_v36  ;;  %793 = vmatpush3.bf16.msra.mxu1 %v872_v38  ;;  %v737_v36 = vld [vmem:[%s1026_s4] ss:$0 sm:$0xff] }
  0x4a   :  { %772 = vmatprep.subr.bf16.mxu0 %v873_v39  ;;  %794 = vmatprep.subr.bf16.mxu1 %v874_v40 }
  0x4d   :  { %773 = vmatpush3.bf16.msra.mxu0 %v875_v41  ;;  %795 = vmatpush3.bf16.msra.mxu1 %v876_v42 }
  0x4e   :  { %774 = vmatprep.subr.bf16.mxu0 %v877_v43  ;;  %796 = vmatprep.subr.bf16.mxu1 %v878_v44 }
  0x51   :  { %775 = vmatpush3.bf16.msra.mxu0 %v879_v45  ;;  %797 = vmatpush3.bf16.msra.mxu1 %v880_v46 }
  0x52   :  { %776 = vmatprep.subr.bf16.mxu0 %v881_v47  ;;  %798 = vmatprep.subr.bf16.mxu1 %v882_v48 }
  0x55   :  { %777 = vmatpush3.bf16.msra.mxu0 %v883_v49  ;;  %799 = vmatpush3.bf16.msra.mxu1 %v884_v50 }
  0x56   :  { %778 = vmatprep.subr.bf16.mxu0 %v885_v51  ;;  %800 = vmatprep.subr.bf16.mxu1 %v886_v52 }
  0x59   :  { %779 = vmatpush3.bf16.msra.mxu0 %v887_v53  ;;  %801 = vmatpush3.bf16.msra.mxu1 %v888_v54 }
  0x5a   :  { %780 = vmatprep.subr.bf16.mxu0 %v889_v55  ;;  %802 = vmatprep.subr.bf16.mxu1 %v890_v56 }
  0x5d   :  { %781 = vmatpush3.bf16.msra.mxu0 %v891_v57  ;;  %803 = vmatpush3.bf16.msra.mxu1 %v892_v58 }
  0x5e   :  { %782 = vmatprep.subr.bf16.mxu0 %v893_v59  ;;  %804 = vmatprep.subr.bf16.mxu1 %v894_v60 }
  0x61   :  { %783 = vmatpush3.bf16.msra.mxu0 %v895_v61  ;;  %805 = vmatpush3.bf16.msra.mxu1 %v896_v62 }
  0x62   :  { %784 = vmatprep.subr.bf16.mxu0 %v897_v63  ;;  %806 = vmatprep.subr.bf16.mxu1 %v898_v0 }
  0x65   :  { %785 = vmatpush3.bf16.msra.mxu0 %v899_v1  ;;  %807 = vmatpush3.bf16.msra.mxu1 %v900_v2 }
 0x11b   :  { %v299_v14 = vpop.f32.mrb[0].mxu0  ;;  %v340_v15 = vpop.f32.mrb[0].mxu1 }
 0x11c   :  { %v300_v16 = vadd.f32 %v299_v14, %v88_v10  ;;  %v341_v17 = vadd.f32 %v340_v15, %v96_v11  ;;  %v301_v18 = vpop.f32.mrb[1].mxu0  ;;  %v342_v19 = vpop.f32.mrb[1].mxu1 }
 0x11d   :  { %v302_v20 = vadd.f32 %v301_v18, %v92_v12  ;;  %v343_v21 = vadd.f32 %v342_v19, %v100_v13  ;;  %v303_v22 = vpop.f32.mrb[2].mxu0  ;;  %v344_v23 = vpop.f32.mrb[2].mxu1 }
 0x11e   :  { %v347_v24 = vmax.f32 %v300_v16, 0.0  ;;  %v349_v25 = vmax.f32 %v341_v17, 0.0  ;;  %v304_v26 = vpop.f32.mrb[3].mxu0  ;;  %v345_v27 = vpop.f32.mrb[3].mxu1 }
 0x11f   :  { %v348_v28 = vmax.f32 %v302_v20, 0.0  ;;  %v350_v29 = vmax.f32 %v343_v21, 0.0 }
 0x120   :  { %v353_v30 = vpack.c.bf16 %v349_v25, %v349_v25  ;;  %v351_v33 = vpack.c.bf16 %v347_v24, %v347_v24 }
 0x121   :  { %v352_v31 = vpack.c.bf16 %v348_v28, %v348_v28  ;;  %v354_v32 = vpack.c.bf16 %v350_v29, %v350_v29 }
 0x123   :  { %650 = vmatprep.mubr.bf16.mxu0 %v352_v31  ;;  %690 = vmatprep.mubr.bf16.mxu1 %v354_v32 }
 0x124   :  { %651 = vmatmul.mubr.bf16.vlgmr.msra.gmra.mrb[4].mxu0 %v351_v33  ;;  %691 = vmatmul.mubr.bf16.vlgmr.msra.gmra.mrb[4].mxu1 %v353_v30 }
 0x1f7   :  { %v786_v34 = vpop.f32.mrb[4].mxu0  ;;  %v808_v35 = vpop.f32.mrb[4].mxu1 }
 0x1f8   :  { %v787_v37 = vpop.f32.mrb[5].mxu0  ;;  %v809_v38 = vpop.f32.mrb[5].mxu1 }
 0x1f9   :  { %v788_v39 = vadd.f32 %v787_v37, %v786_v34  ;;  %v810_v40 = vadd.f32 %v809_v38, %v808_v35  ;;  %v789_v41 = vpop.f32.mrb[6].mxu0  ;;  %v811_v42 = vpop.f32.mrb[6].mxu1 }
 0x1fa   :  { %v790_v43 = vpop.f32.mrb[7].mxu0  ;;  %v812_v44 = vpop.f32.mrb[7].mxu1 }
 0x1fb   :  { %v653_v45 = vadd.f32 %v788_v39, %v737_v36 }
 0x1fd   :  { %v693_v46 = vadd.f32 %v810_v40, %v653_v45 }
 0x1ff   :  { %698 = vst [vmem:[%s1027_s5] sm:$0x3] %v693_v46 }
 0x200   :  { %703 = vsyncpa [#allocation3], 1 }
 0x201   :  { %704 = vsyncpa [#allocation5], 1 }

</bundles_post_ra>
